<compile_context>
chip_gen: v7x
topology: tpu7x:2x2x1
jax: 0.10.0
libtpu: 0.0.40
codegen_flags: <defaults>
</compile_context>

<pallas_src>
import functools

import numpy as np

import jax
import jax.numpy as jnp
from jax.experimental import pallas as pl
from jax.experimental.pallas import tpu as pltpu

_SUBLANE = 8


# ------------------------------ helpers --------------------------------------
def _round_up(x, m):
    return ((x + m - 1) // m) * m


def _pick_tiles(n):
    """(tm, tk, n_pad) honoring the (8,128)-or-full-dim BlockSpec rule.

    tm == tk so the pool matrix block (B, tm) is either a multiple of 128
    (large N) or the full padded width (small N)."""
    if n >= 256:
        return 256, 256, _round_up(n, 256)
    n_pad = _round_up(n, _SUBLANE)
    return n_pad, n_pad, n_pad


def _vmem_limit(block_bytes):
    # Double-buffered pipeline blocks + accumulator/internal headroom,
    # clamped to v7x's 64 MiB physical VMEM.
    return int(min(max(4 * block_bytes + (2 << 20), 8 << 20), 64 << 20))


def _block_structure_np(a_np, tm, tk):
    """Block-CSR over (tm, tk) tiles of the padded adjacency (host, one-time).

    For row-tile r, the j-th nonzero column-block index is
    cols_flat[r * max_nnz + j]; counts[r] is the number of valid entries.
    Padded slots repeat the last valid block index so the pipeline keeps
    pointing at an already-resident tile (compute is skipped via pl.when).
    """
    R, C = a_np.shape[0] // tm, a_np.shape[1] // tk
    mask = (a_np.reshape(R, tm, C, tk) != 0.0).any(axis=(1, 3))   # (R, C)
    counts = mask.sum(axis=1).astype(np.int32)
    max_nnz = max(int(counts.max()) if counts.size else 0, 1)
    cols = np.zeros((R, max_nnz), np.int32)
    for r in range(R):
        nz = np.nonzero(mask[r])[0].astype(np.int32)
        if nz.size:
            cols[r, :nz.size] = nz
            cols[r, nz.size:] = nz[-1]
    return jnp.asarray(cols.reshape(-1)), jnp.asarray(counts), max_nnz


# ----------------------------- Pallas kernels ---------------------------------
def gcn_relu_kernel(cols_ref, cnts_ref,            # scalar prefetch (SMEM)
                    a_ref, h_ref, w_ref, b_ref,    # VMEM blocks
                    o_ref,                         # output block
                    acc_ref):                      # f32 accumulator scratch
    r = pl.program_id(0)          # row tile of A / output (parallel)
    j = pl.program_id(1)          # nonzero column-block slot (reduction)

    @pl.when(j == 0)
    def _():
        acc_ref[...] = jnp.zeros_like(acc_ref)

    # Skip padded slots beyond this row tile's nonzero-block count.
    @pl.when(j < cnts_ref[r])
    def _():
        # Feature transform recomputed per tile (F_in < F_out, so streaming H
        # and recomputing H@W is less HBM traffic than streaming H@W).
        hw = jnp.dot(h_ref[...], w_ref[...],
                     preferred_element_type=jnp.float32).astype(jnp.bfloat16)
        acc_ref[...] += jnp.dot(a_ref[...], hw,
                                preferred_element_type=jnp.float32)

    @pl.when(j == pl.num_programs(1) - 1)
    def _():
        o_ref[...] = jnp.maximum(acc_ref[...] + b_ref[...], 0.0).astype(o_ref.dtype)


def gcn_pool_head_kernel(cols_ref, cnts_ref,
                         a_ref, h_ref, w2_ref, b2_ref, pool_ref, w3_ref, b3_ref,
                         o_ref,
                         acc_h, acc_o):
    r = pl.program_id(0)          # row tile (reduction for the pooled output)
    j = pl.program_id(1)          # nonzero column-block slot (reduction)
    last_r = pl.num_programs(0) - 1
    last_j = pl.num_programs(1) - 1

    @pl.when(jnp.logical_and(r == 0, j == 0))
    def _():
        acc_o[...] = jnp.zeros_like(acc_o)

    @pl.when(j == 0)
    def _():
        acc_h[...] = jnp.zeros_like(acc_h)

    @pl.when(j < cnts_ref[r])
    def _():
        hw = jnp.dot(h_ref[...], w2_ref[...],
                     preferred_element_type=jnp.float32).astype(jnp.bfloat16)
        acc_h[...] += jnp.dot(a_ref[...], hw,
                              preferred_element_type=jnp.float32)

    # Finalize this row tile of H2 and fold it straight into the pooled sums
    # (global_mean_pool fused) -- H2 never touches HBM.
    @pl.when(j == last_j)
    def _():
        h2_tile = acc_h[...] + b2_ref[...]                    # (tm, 32) f32
        acc_o[...] += jnp.dot(pool_ref[...], h2_tile,
                              preferred_element_type=jnp.float32)  # (B, 32)

    @pl.when(jnp.logical_and(r == last_r, j == last_j))
    def _():
        logits = jnp.dot(acc_o[...], w3_ref[...],
                         preferred_element_type=jnp.float32) + b3_ref[...]
        o_ref[...] = jax.nn.sigmoid(logits)


# ----------------------------- kernel wrappers --------------------------------
def gcn_layer1(a_p, x_p, w1, b1, cols, cnts, max_nnz, *, tm, tk):
    n_pad = a_p.shape[0]
    f_in, f_out = w1.shape
    n_row_tiles = n_pad // tm

    blk_bytes = ((tm * tk + tk * f_in + f_in * f_out + tm * f_out) * 2
                 + (f_out + tm * f_out) * 4)

    return pl.pallas_call(
        gcn_relu_kernel,
        out_shape=jax.ShapeDtypeStruct((n_pad, f_out), jnp.bfloat16),
        grid_spec=pltpu.PrefetchScalarGridSpec(
            num_scalar_prefetch=2,
            grid=(n_row_tiles, max_nnz),
            in_specs=[
                # A: only nonzero (tm, tk) blocks, via the prefetched block-CSR.
                pl.BlockSpec(
                    (tm, tk),
                    lambda r, j, cols_s, cnts_s: (r, cols_s[r * max_nnz + j])),
                # X rows matching the selected A column block.
                pl.BlockSpec(
                    (tk, f_in),
                    lambda r, j, cols_s, cnts_s: (cols_s[r * max_nnz + j], 0)),
                pl.BlockSpec((f_in, f_out), lambda r, j, cols_s, cnts_s: (0, 0)),
                pl.BlockSpec((1, f_out), lambda r, j, cols_s, cnts_s: (0, 0)),
            ],
            out_specs=pl.BlockSpec((tm, f_out),
                                   lambda r, j, cols_s, cnts_s: (r, 0)),
            scratch_shapes=[pltpu.VMEM((tm, f_out), jnp.float32)],
        ),
        compiler_params=pltpu.CompilerParams(
            dimension_semantics=("parallel", "arbitrary"),
            vmem_limit_bytes=_vmem_limit(blk_bytes),
        ),
    )(cols, cnts, a_p, x_p, w1, b1)


def gcn_pool_head(a_p, h1, w2, b2, pool_p, w3, b3, cols, cnts, max_nnz, *, tm, tk):
    n_pad = a_p.shape[0]
    f_in, f_out = w2.shape
    num_graphs = pool_p.shape[0]
    n_row_tiles = n_pad // tm

    blk_bytes = ((tm * tk + tk * f_in + f_in * f_out) * 2
                 + (f_out + num_graphs * tm + f_out + 1
                    + tm * f_out + num_graphs * f_out + num_graphs) * 4)

    return pl.pallas_call(
        gcn_pool_head_kernel,
        out_shape=jax.ShapeDtypeStruct((num_graphs, 1), jnp.float32),
        grid_spec=pltpu.PrefetchScalarGridSpec(
            num_scalar_prefetch=2,
            grid=(n_row_tiles, max_nnz),
            in_specs=[
                pl.BlockSpec(
                    (tm, tk),
                    lambda r, j, cols_s, cnts_s: (r, cols_s[r * max_nnz + j])),
                pl.BlockSpec(
                    (tk, f_in),
                    lambda r, j, cols_s, cnts_s: (cols_s[r * max_nnz + j], 0)),
                pl.BlockSpec((f_in, f_out), lambda r, j, cols_s, cnts_s: (0, 0)),
                pl.BlockSpec((1, f_out), lambda r, j, cols_s, cnts_s: (0, 0)),
                # Pool columns matching this row tile of H2.
                pl.BlockSpec((num_graphs, tm),
                             lambda r, j, cols_s, cnts_s: (0, r)),
                pl.BlockSpec((f_out, 1), lambda r, j, cols_s, cnts_s: (0, 0)),
                pl.BlockSpec((1, 1), lambda r, j, cols_s, cnts_s: (0, 0)),
            ],
            out_specs=pl.BlockSpec((num_graphs, 1),
                                   lambda r, j, cols_s, cnts_s: (0, 0)),
            scratch_shapes=[pltpu.VMEM((tm, f_out), jnp.float32),
                            pltpu.VMEM((num_graphs, f_out), jnp.float32)],
        ),
        compiler_params=pltpu.CompilerParams(
            # Both axes are reductions for the pooled output accumulator.
            dimension_semantics=("arbitrary", "arbitrary"),
            vmem_limit_bytes=_vmem_limit(blk_bytes),
        ),
    )(cols, cnts, a_p, h1, w2, b2, pool_p, w3, b3)


@functools.partial(jax.jit, static_argnames=("max_nnz", "tm", "tk"))
def _gnn_forward_padded(a_p, x_p, pool_p, cols, cnts,
                        w1, b1, w2, b2, w3, b3, *, max_nnz, tm, tk):
    h1 = gcn_layer1(a_p, x_p, w1, b1, cols, cnts, max_nnz, tm=tm, tk=tk)
    # F.dropout(training=False) -> identity (module is in eval mode).
    return gcn_pool_head(a_p, h1, w2, b2, pool_p, w3, b3,
                         cols, cnts, max_nnz, tm=tm, tk=tk)


def gnn_forward(a_hat, x, w1, b1, w2, b2, pool, w3, b3):
    """Host wrapper: one-time padding + block-CSR preprocess, then jitted kernels."""
    n = a_hat.shape[0]
    tm, tk, n_pad = _pick_tiles(n)
    pad = n_pad - n

    # One-time host-side preprocessing of the (static) graph structure.
    a_np = np.pad(np.asarray(jax.device_get(a_hat), np.float32),
                  ((0, pad), (0, pad)))
    cols, cnts, max_nnz = _block_structure_np(a_np, tm, tk)

    # Padded A rows/cols and pool columns are zero, so padded nodes never
    # contribute to real outputs.
    a_p = jnp.asarray(a_np, jnp.bfloat16)
    x_p = jnp.pad(x, ((0, pad), (0, 0))).astype(jnp.bfloat16)
    pool_p = jnp.pad(pool, ((0, 0), (0, pad))).astype(jnp.float32)

    return _gnn_forward_padded(
        a_p, x_p, pool_p, cols, cnts,
        w1.astype(jnp.bfloat16), b1.astype(jnp.float32),
        w2.astype(jnp.bfloat16), b2.astype(jnp.float32),
        w3.astype(jnp.float32), b3.astype(jnp.float32),
        max_nnz=max_nnz, tm=tm, tk=tk)


# ------------------------------ JAX glue --------------------------------------
def build_normalized_adjacency(edge_index, num_nodes):
    """Dense equivalent of PyG GCNConv propagation: D^-1/2 (A + I) D^-1/2."""
    src, dst = edge_index[0], edge_index[1]
    adj = jnp.zeros((num_nodes, num_nodes), jnp.float32)
    adj = adj.at[dst, src].set(1.0)                                      # src -> dst
    adj = adj.at[jnp.arange(num_nodes), jnp.arange(num_nodes)].set(1.0)  # self loops
    deg = adj.sum(axis=1)
    d_inv_sqrt = jnp.where(deg > 0, jax.lax.rsqrt(deg), 0.0)
    return d_inv_sqrt[:, None] * adj * d_inv_sqrt[None, :]


def build_pool_matrix(batch, num_graphs):
    """(B, N) matrix with row b = indicator(batch == b) / count_b."""
    onehot = (batch[None, :] == jnp.arange(num_graphs)[:, None]).astype(jnp.float32)
    counts = jnp.maximum(onehot.sum(axis=1, keepdims=True), 1.0)
    return onehot / counts


def glorot(key, shape):
    fan_in, fan_out = shape
    limit = jnp.sqrt(6.0 / (fan_in + fan_out))
    return jax.random.uniform(key, shape, jnp.float32, -limit, limit)


def gnn_reference(a_hat, x, w1, b1, w2, b2, pool, w3, b3):
    """Pure-JAX float32 reference of the same forward pass."""
    h1 = jnp.maximum(a_hat @ (x @ w1) + b1, 0.0)
    h2 = a_hat @ (h1 @ w2) + b2
    return jax.nn.sigmoid(pool @ h2 @ w3 + b3)


if __name__ == "__main__":
    key = jax.random.PRNGKey(0)
    k1, k2, k3, k4, kx = jax.random.split(key, 5)

    # Small synthetic graph batch: 2 graphs x 8 nodes = 16 nodes, 2 features.
    num_nodes, in_feats, hid1, hid2, num_graphs = 16, 2, 16, 32, 2
    x = jax.random.normal(kx, (num_nodes, in_feats), jnp.float32)
    batch = jnp.array([0] * 8 + [1] * 8, jnp.int32)

    # Bidirectional ring inside each graph of 8 nodes (deterministic edges).
    src_list, dst_list = [], []
    for g in range(num_graphs):
        base = g * 8
        for i in range(8):
            a, b = base + i, base + (i + 1) % 8
            src_list += [a, b]
            dst_list += [b, a]
    edge_index = jnp.array([src_list, dst_list], jnp.int32)   # (2, E)

    a_hat = build_normalized_adjacency(edge_index, num_nodes)
    pool = build_pool_matrix(batch, num_graphs)

    # Deterministic parameter init (GCNConv uses glorot weights, zero bias;
    # Linear init kept glorot-style for determinism, not bit-matching torch).
    w1 = glorot(k1, (in_feats, hid1))
    b1 = jnp.zeros((1, hid1), jnp.float32)
    w2 = glorot(k2, (hid1, hid2))
    b2 = jnp.zeros((1, hid2), jnp.float32)
    w3 = glorot(k3, (hid2, 1))
    b3 = jax.random.uniform(k4, (1, 1), jnp.float32, -1.0, 1.0) * (1.0 / jnp.sqrt(hid2))

    out = gnn_forward(a_hat, x, w1, b1, w2, b2, pool, w3, b3)
    jax.block_until_ready(out)

    ref = gnn_reference(a_hat, x, w1, b1, w2, b2, pool, w3, b3)
    assert out.shape == (num_graphs, 1)
    assert bool(jnp.all((out >= 0.0) & (out <= 1.0)))
    assert bool(jnp.allclose(out, ref, atol=3e-2)), (out, ref)
    print("KERNEL_OK")
</pallas_src>

<mosaic_0001>
module attributes {stable_mosaic.version = 11 : i64} {
  func.func @gcn_relu_kernel(%arg0: i32, %arg1: i32, %arg2: memref<1xi32, #tpu.memory_space<smem>>, %arg3: memref<1xi32, #tpu.memory_space<smem>>, %arg4: memref<16x16xbf16, #tpu.memory_space<vmem>>, %arg5: memref<16x2xbf16, #tpu.memory_space<vmem>>, %arg6: memref<2x16xbf16, #tpu.memory_space<vmem>>, %arg7: memref<1x16xf32, #tpu.memory_space<vmem>>, %arg8: memref<16x16xbf16, #tpu.memory_space<vmem>>, %arg9: memref<16x16xf32, #tpu.memory_space<vmem>>) attributes {dimension_semantics = [#tpu.dimension_semantics<parallel>, #tpu.dimension_semantics<arbitrary>], iteration_bounds = array<i64: 1, 1>, scalar_prefetch = 2 : i64, scratch_operands = 1 : i64, tpu.core_type = #tpu.core_type<tc>, window_params = [{transform_indices = @transform_0, window_bounds = array<i64: 16, 16>}, {transform_indices = @transform_1, window_bounds = array<i64: 16, 2>}, {pipeline_mode = #tpu.pipeline_mode<synchronous>, transform_indices = @transform_2, window_bounds = array<i64: 2, 16>}, {pipeline_mode = #tpu.pipeline_mode<synchronous>, transform_indices = @transform_3, window_bounds = array<i64: 1, 16>}, {transform_indices = @transform_4, window_bounds = array<i64: 16, 16>}]} {
    %c0_i32 = arith.constant 0 : i32
    %0 = arith.cmpi eq, %arg1, %c0_i32 : i32
    %1 = arith.extui %0 : i1 to i32
    %c0_i32_0 = arith.constant 0 : i32
    %2 = arith.cmpi ne, %1, %c0_i32_0 : i32
    scf.if %2 {
      %cst = arith.constant 0.000000e+00 : f32
      %11 = vector.broadcast %cst : f32 to vector<16x16xf32>
      %c0 = arith.constant 0 : index
      %c0_4 = arith.constant 0 : index
      %12 = vector.load %arg9[%c0, %c0_4] : memref<16x16xf32, #tpu.memory_space<vmem>>, vector<16x16xf32>
      tpu.vector_store %arg9[%c0, %c0_4], %11 {strides = array<i32>} : memref<16x16xf32, #tpu.memory_space<vmem>>, vector<16x16xf32>,
    } else {
    }
    %3 = arith.index_cast %arg0 : i32 to index
    %4 = memref.load %arg3[%3] : memref<1xi32, #tpu.memory_space<smem>>
    %5 = arith.cmpi slt, %arg1, %4 : i32
    %6 = arith.extui %5 : i1 to i32
    %c0_i32_1 = arith.constant 0 : i32
    %7 = arith.cmpi ne, %6, %c0_i32_1 : i32
    scf.if %7 {
      %c0 = arith.constant 0 : index
      %c0_4 = arith.constant 0 : index
      %11 = vector.load %arg5[%c0, %c0_4] : memref<16x2xbf16, #tpu.memory_space<vmem>>, vector<16x2xbf16>
      %c0_5 = arith.constant 0 : index
      %c0_6 = arith.constant 0 : index
      %12 = vector.load %arg6[%c0_5, %c0_6] : memref<2x16xbf16, #tpu.memory_space<vmem>>, vector<2x16xbf16>
      %cst = arith.constant dense<0.000000e+00> : vector<16x16xf32>
      %13 = tpu.matmul %11, %12, %cst {dimension_numbers = #tpu.dot_dimension_numbers<[1], [0], [0], [1], [0, 0, 1, 1], [], []>} : vector<16x2xbf16>, vector<2x16xbf16>, vector<16x16xf32> -> vector<16x16xf32>
      %14 = arith.truncf %13 : vector<16x16xf32> to vector<16x16xbf16>
      %c0_7 = arith.constant 0 : index
      %c0_8 = arith.constant 0 : index
      %15 = vector.load %arg9[%c0_7, %c0_8] : memref<16x16xf32, #tpu.memory_space<vmem>>, vector<16x16xf32>
      %c0_9 = arith.constant 0 : index
      %c0_10 = arith.constant 0 : index
      %16 = vector.load %arg4[%c0_9, %c0_10] : memref<16x16xbf16, #tpu.memory_space<vmem>>, vector<16x16xbf16>
      %cst_11 = arith.constant dense<0.000000e+00> : vector<16x16xf32>
      %17 = tpu.matmul %16, %14, %cst_11 {dimension_numbers = #tpu.dot_dimension_numbers<[1], [0], [0], [1], [0, 0, 1, 1], [], []>} : vector<16x16xbf16>, vector<16x16xbf16>, vector<16x16xf32> -> vector<16x16xf32>
      %18 = arith.addf %15, %17 : vector<16x16xf32>
      %c0_12 = arith.constant 0 : index
      %c0_13 = arith.constant 0 : index
      %19 = vector.load %arg9[%c0_12, %c0_13] : memref<16x16xf32, #tpu.memory_space<vmem>>, vector<16x16xf32>
      tpu.vector_store %arg9[%c0_12, %c0_13], %18 {strides = array<i32>} : memref<16x16xf32, #tpu.memory_space<vmem>>, vector<16x16xf32>,
    } else {
    }
    %c0_i32_2 = arith.constant 0 : i32
    %8 = arith.cmpi eq, %arg1, %c0_i32_2 : i32
    %9 = arith.extui %8 : i1 to i32
    %c0_i32_3 = arith.constant 0 : i32
    %10 = arith.cmpi ne, %9, %c0_i32_3 : i32
    scf.if %10 {
      %c0 = arith.constant 0 : index
      %c0_4 = arith.constant 0 : index
      %11 = vector.load %arg9[%c0, %c0_4] : memref<16x16xf32, #tpu.memory_space<vmem>>, vector<16x16xf32>
      %c0_5 = arith.constant 0 : index
      %c0_6 = arith.constant 0 : index
      %12 = vector.load %arg7[%c0_5, %c0_6] : memref<1x16xf32, #tpu.memory_space<vmem>>, vector<1x16xf32>
      %13 = vector.broadcast %12 : vector<1x16xf32> to vector<16x16xf32>
      %14 = arith.addf %11, %13 : vector<16x16xf32>
      %cst = arith.constant 0.000000e+00 : f32
      %15 = vector.broadcast %cst : f32 to vector<16x16xf32>
      %16 = arith.maximumf %14, %15 : vector<16x16xf32>
      %17 = arith.truncf %16 : vector<16x16xf32> to vector<16x16xbf16>
      %c0_7 = arith.constant 0 : index
      %c0_8 = arith.constant 0 : index
      %18 = vector.load %arg8[%c0_7, %c0_8] : memref<16x16xbf16, #tpu.memory_space<vmem>>, vector<16x16xbf16>
      tpu.vector_store %arg8[%c0_7, %c0_8], %17 {strides = array<i32>} : memref<16x16xbf16, #tpu.memory_space<vmem>>, vector<16x16xbf16>,
    } else {
    }
    return
  }
  func.func @transform_0(%arg0: i32, %arg1: i32, %arg2: memref<1xi32, #tpu.memory_space<smem>>, %arg3: memref<1xi32, #tpu.memory_space<smem>>) -> (i32, i32) {
    %c1_i32 = arith.constant 1 : i32
    %0 = arith.muli %arg0, %c1_i32 : i32
    %1 = arith.addi %0, %arg1 : i32
    %2 = arith.index_cast %1 : i32 to index
    %3 = memref.load %arg2[%2] : memref<1xi32, #tpu.memory_space<smem>>
    %c0_i32 = arith.constant 0 : i32
    return %arg0, %3 : i32, i32
  }
  func.func @transform_1(%arg0: i32, %arg1: i32, %arg2: memref<1xi32, #tpu.memory_space<smem>>, %arg3: memref<1xi32, #tpu.memory_space<smem>>) -> (i32, i32) {
    %c1_i32 = arith.constant 1 : i32
    %0 = arith.muli %arg0, %c1_i32 : i32
    %1 = arith.addi %0, %arg1 : i32
    %2 = arith.index_cast %1 : i32 to index
    %3 = memref.load %arg2[%2] : memref<1xi32, #tpu.memory_space<smem>>
    %c0_i32 = arith.constant 0 : i32
    %c0_i32_0 = arith.constant 0 : i32
    return %3, %c0_i32 : i32, i32
  }
  func.func @transform_2(%arg0: i32, %arg1: i32, %arg2: memref<1xi32, #tpu.memory_space<smem>>, %arg3: memref<1xi32, #tpu.memory_space<smem>>) -> (i32, i32) {
    %c0_i32 = arith.constant 0 : i32
    %c0_i32_0 = arith.constant 0 : i32
    %c0_i32_1 = arith.constant 0 : i32
    return %c0_i32, %c0_i32_0 : i32, i32
  }
  func.func @transform_3(%arg0: i32, %arg1: i32, %arg2: memref<1xi32, #tpu.memory_space<smem>>, %arg3: memref<1xi32, #tpu.memory_space<smem>>) -> (i32, i32) {
    %c0_i32 = arith.constant 0 : i32
    %c0_i32_0 = arith.constant 0 : i32
    %c0_i32_1 = arith.constant 0 : i32
    return %c0_i32, %c0_i32_0 : i32, i32
  }
  func.func @transform_4(%arg0: i32, %arg1: i32, %arg2: memref<1xi32, #tpu.memory_space<smem>>, %arg3: memref<1xi32, #tpu.memory_space<smem>>) -> (i32, i32) {
    %c0_i32 = arith.constant 0 : i32
    %c0_i32_0 = arith.constant 0 : i32
    return %arg0, %c0_i32 : i32, i32
  }
}

module attributes {stable_mosaic.version = 11 : i64} {
  func.func @gcn_pool_head_kernel(%arg0: i32, %arg1: i32, %arg2: memref<1xi32, #tpu.memory_space<smem>>, %arg3: memref<1xi32, #tpu.memory_space<smem>>, %arg4: memref<16x16xbf16, #tpu.memory_space<vmem>>, %arg5: memref<16x16xbf16, #tpu.memory_space<vmem>>, %arg6: memref<16x32xbf16, #tpu.memory_space<vmem>>, %arg7: memref<1x32xf32, #tpu.memory_space<vmem>>, %arg8: memref<2x16xf32, #tpu.memory_space<vmem>>, %arg9: memref<32x1xf32, #tpu.memory_space<vmem>>, %arg10: memref<1x1xf32, #tpu.memory_space<vmem>>, %arg11: memref<2x1xf32, #tpu.memory_space<vmem>>, %arg12: memref<16x32xf32, #tpu.memory_space<vmem>>, %arg13: memref<2x32xf32, #tpu.memory_space<vmem>>) attributes {dimension_semantics = [#tpu.dimension_semantics<arbitrary>, #tpu.dimension_semantics<arbitrary>], iteration_bounds = array<i64: 1, 1>, scalar_prefetch = 2 : i64, scratch_operands = 2 : i64, tpu.core_type = #tpu.core_type<tc>, window_params = [{transform_indices = @transform_0, window_bounds = array<i64: 16, 16>}, {transform_indices = @transform_1, window_bounds = array<i64: 16, 16>}, {pipeline_mode = #tpu.pipeline_mode<synchronous>, transform_indices = @transform_2, window_bounds = array<i64: 16, 32>}, {pipeline_mode = #tpu.pipeline_mode<synchronous>, transform_indices = @transform_3, window_bounds = array<i64: 1, 32>}, {transform_indices = @transform_4, window_bounds = array<i64: 2, 16>}, {pipeline_mode = #tpu.pipeline_mode<synchronous>, transform_indices = @transform_5, window_bounds = array<i64: 32, 1>}, {pipeline_mode = #tpu.pipeline_mode<synchronous>, transform_indices = @transform_6, window_bounds = array<i64: 1, 1>}, {pipeline_mode = #tpu.pipeline_mode<synchronous>, transform_indices = @transform_7, window_bounds = array<i64: 2, 1>}]} {
    %c0_i32 = arith.constant 0 : i32
    %0 = arith.cmpi eq, %arg0, %c0_i32 : i32
    %c0_i32_0 = arith.constant 0 : i32
    %1 = arith.cmpi eq, %arg1, %c0_i32_0 : i32
    %2 = arith.andi %0, %1 : i1
    %3 = arith.extui %2 : i1 to i32
    %c0_i32_1 = arith.constant 0 : i32
    %4 = arith.cmpi ne, %3, %c0_i32_1 : i32
    scf.if %4 {
      %cst = arith.constant 0.000000e+00 : f32
      %21 = vector.broadcast %cst : f32 to vector<2x32xf32>
      %c0 = arith.constant 0 : index
      %c0_10 = arith.constant 0 : index
      %22 = vector.load %arg13[%c0, %c0_10] : memref<2x32xf32, #tpu.memory_space<vmem>>, vector<2x32xf32>
      tpu.vector_store %arg13[%c0, %c0_10], %21 {strides = array<i32>} : memref<2x32xf32, #tpu.memory_space<vmem>>, vector<2x32xf32>,
    } else {
    }
    %c0_i32_2 = arith.constant 0 : i32
    %5 = arith.cmpi eq, %arg1, %c0_i32_2 : i32
    %6 = arith.extui %5 : i1 to i32
    %c0_i32_3 = arith.constant 0 : i32
    %7 = arith.cmpi ne, %6, %c0_i32_3 : i32
    scf.if %7 {
      %cst = arith.constant 0.000000e+00 : f32
      %21 = vector.broadcast %cst : f32 to vector<16x32xf32>
      %c0 = arith.constant 0 : index
      %c0_10 = arith.constant 0 : index
      %22 = vector.load %arg12[%c0, %c0_10] : memref<16x32xf32, #tpu.memory_space<vmem>>, vector<16x32xf32>
      tpu.vector_store %arg12[%c0, %c0_10], %21 {strides = array<i32>} : memref<16x32xf32, #tpu.memory_space<vmem>>, vector<16x32xf32>,
    } else {
    }
    %8 = arith.index_cast %arg0 : i32 to index
    %9 = memref.load %arg3[%8] : memref<1xi32, #tpu.memory_space<smem>>
    %10 = arith.cmpi slt, %arg1, %9 : i32
    %11 = arith.extui %10 : i1 to i32
    %c0_i32_4 = arith.constant 0 : i32
    %12 = arith.cmpi ne, %11, %c0_i32_4 : i32
    scf.if %12 {
      %c0 = arith.constant 0 : index
      %c0_10 = arith.constant 0 : index
      %21 = vector.load %arg5[%c0, %c0_10] : memref<16x16xbf16, #tpu.memory_space<vmem>>, vector<16x16xbf16>
      %c0_11 = arith.constant 0 : index
      %c0_12 = arith.constant 0 : index
      %22 = vector.load %arg6[%c0_11, %c0_12] : memref<16x32xbf16, #tpu.memory_space<vmem>>, vector<16x32xbf16>
      %cst = arith.constant dense<0.000000e+00> : vector<16x32xf32>
      %23 = tpu.matmul %21, %22, %cst {dimension_numbers = #tpu.dot_dimension_numbers<[1], [0], [0], [1], [0, 0, 1, 1], [], []>} : vector<16x16xbf16>, vector<16x32xbf16>, vector<16x32xf32> -> vector<16x32xf32>
      %24 = arith.truncf %23 : vector<16x32xf32> to vector<16x32xbf16>
      %c0_13 = arith.constant 0 : index
      %c0_14 = arith.constant 0 : index
      %25 = vector.load %arg12[%c0_13, %c0_14] : memref<16x32xf32, #tpu.memory_space<vmem>>, vector<16x32xf32>
      %c0_15 = arith.constant 0 : index
      %c0_16 = arith.constant 0 : index
      %26 = vector.load %arg4[%c0_15, %c0_16] : memref<16x16xbf16, #tpu.memory_space<vmem>>, vector<16x16xbf16>
      %cst_17 = arith.constant dense<0.000000e+00> : vector<16x32xf32>
      %27 = tpu.matmul %26, %24, %cst_17 {dimension_numbers = #tpu.dot_dimension_numbers<[1], [0], [0], [1], [0, 0, 1, 1], [], []>} : vector<16x16xbf16>, vector<16x32xbf16>, vector<16x32xf32> -> vector<16x32xf32>
      %28 = arith.addf %25, %27 : vector<16x32xf32>
      %c0_18 = arith.constant 0 : index
      %c0_19 = arith.constant 0 : index
      %29 = vector.load %arg12[%c0_18, %c0_19] : memref<16x32xf32, #tpu.memory_space<vmem>>, vector<16x32xf32>
      tpu.vector_store %arg12[%c0_18, %c0_19], %28 {strides = array<i32>} : memref<16x32xf32, #tpu.memory_space<vmem>>, vector<16x32xf32>,
    } else {
    }
    %c0_i32_5 = arith.constant 0 : i32
    %13 = arith.cmpi eq, %arg1, %c0_i32_5 : i32
    %14 = arith.extui %13 : i1 to i32
    %c0_i32_6 = arith.constant 0 : i32
    %15 = arith.cmpi ne, %14, %c0_i32_6 : i32
    scf.if %15 {
      %c0 = arith.constant 0 : index
      %c0_10 = arith.constant 0 : index
      %21 = vector.load %arg12[%c0, %c0_10] : memref<16x32xf32, #tpu.memory_space<vmem>>, vector<16x32xf32>
      %c0_11 = arith.constant 0 : index
      %c0_12 = arith.constant 0 : index
      %22 = vector.load %arg7[%c0_11, %c0_12] : memref<1x32xf32, #tpu.memory_space<vmem>>, vector<1x32xf32>
      %23 = vector.broadcast %22 : vector<1x32xf32> to vector<16x32xf32>
      %24 = arith.addf %21, %23 : vector<16x32xf32>
      %c0_13 = arith.constant 0 : index
      %c0_14 = arith.constant 0 : index
      %25 = vector.load %arg13[%c0_13, %c0_14] : memref<2x32xf32, #tpu.memory_space<vmem>>, vector<2x32xf32>
      %c0_15 = arith.constant 0 : index
      %c0_16 = arith.constant 0 : index
      %26 = vector.load %arg8[%c0_15, %c0_16] : memref<2x16xf32, #tpu.memory_space<vmem>>, vector<2x16xf32>
      %cst = arith.constant dense<0.000000e+00> : vector<2x32xf32>
      %27 = tpu.matmul %26, %24, %cst {dimension_numbers = #tpu.dot_dimension_numbers<[1], [0], [0], [1], [0, 0, 1, 1], [], []>} : vector<2x16xf32>, vector<16x32xf32>, vector<2x32xf32> -> vector<2x32xf32>
      %28 = arith.addf %25, %27 : vector<2x32xf32>
      %c0_17 = arith.constant 0 : index
      %c0_18 = arith.constant 0 : index
      %29 = vector.load %arg13[%c0_17, %c0_18] : memref<2x32xf32, #tpu.memory_space<vmem>>, vector<2x32xf32>
      tpu.vector_store %arg13[%c0_17, %c0_18], %28 {strides = array<i32>} : memref<2x32xf32, #tpu.memory_space<vmem>>, vector<2x32xf32>,
    } else {
    }
    %c0_i32_7 = arith.constant 0 : i32
    %16 = arith.cmpi eq, %arg0, %c0_i32_7 : i32
    %c0_i32_8 = arith.constant 0 : i32
    %17 = arith.cmpi eq, %arg1, %c0_i32_8 : i32
    %18 = arith.andi %16, %17 : i1
    %19 = arith.extui %18 : i1 to i32
    %c0_i32_9 = arith.constant 0 : i32
    %20 = arith.cmpi ne, %19, %c0_i32_9 : i32
    scf.if %20 {
      %c0 = arith.constant 0 : index
      %c0_10 = arith.constant 0 : index
      %21 = vector.load %arg13[%c0, %c0_10] : memref<2x32xf32, #tpu.memory_space<vmem>>, vector<2x32xf32>
      %c0_11 = arith.constant 0 : index
      %c0_12 = arith.constant 0 : index
      %22 = vector.load %arg9[%c0_11, %c0_12] : memref<32x1xf32, #tpu.memory_space<vmem>>, vector<32x1xf32>
      %cst = arith.constant dense<0.000000e+00> : vector<2x1xf32>
      %23 = tpu.matmul %21, %22, %cst {dimension_numbers = #tpu.dot_dimension_numbers<[1], [0], [0], [1], [0, 0, 1, 1], [], []>} : vector<2x32xf32>, vector<32x1xf32>, vector<2x1xf32> -> vector<2x1xf32>
      %c0_13 = arith.constant 0 : index
      %c0_14 = arith.constant 0 : index
      %24 = vector.load %arg10[%c0_13, %c0_14] : memref<1x1xf32, #tpu.memory_space<vmem>>, vector<1x1xf32>
      %25 = vector.broadcast %24 : vector<1x1xf32> to vector<2x1xf32>
      %26 = arith.addf %23, %25 : vector<2x1xf32>
      %27 = arith.negf %26 : vector<2x1xf32>
      %28 = math.exp %27 : vector<2x1xf32>
      %cst_15 = arith.constant 1.000000e+00 : f32
      %29 = vector.broadcast %cst_15 : f32 to vector<2x1xf32>
      %30 = arith.addf %29, %28 : vector<2x1xf32>
      %31 = arith.divf %29, %30 : vector<2x1xf32>
      %c0_16 = arith.constant 0 : index
      %c0_17 = arith.constant 0 : index
      %32 = vector.load %arg11[%c0_16, %c0_17] : memref<2x1xf32, #tpu.memory_space<vmem>>, vector<2x1xf32>
      tpu.vector_store %arg11[%c0_16, %c0_17], %31 {strides = array<i32>} : memref<2x1xf32, #tpu.memory_space<vmem>>, vector<2x1xf32>,
    } else {
    }
    return
  }
  func.func @transform_0(%arg0: i32, %arg1: i32, %arg2: memref<1xi32, #tpu.memory_space<smem>>, %arg3: memref<1xi32, #tpu.memory_space<smem>>) -> (i32, i32) {
    %c1_i32 = arith.constant 1 : i32
    %0 = arith.muli %arg0, %c1_i32 : i32
    %1 = arith.addi %0, %arg1 : i32
    %2 = arith.index_cast %1 : i32 to index
    %3 = memref.load %arg2[%2] : memref<1xi32, #tpu.memory_space<smem>>
    %c0_i32 = arith.constant 0 : i32
    return %arg0, %3 : i32, i32
  }
  func.func @transform_1(%arg0: i32, %arg1: i32, %arg2: memref<1xi32, #tpu.memory_space<smem>>, %arg3: memref<1xi32, #tpu.memory_space<smem>>) -> (i32, i32) {
    %c1_i32 = arith.constant 1 : i32
    %0 = arith.muli %arg0, %c1_i32 : i32
    %1 = arith.addi %0, %arg1 : i32
    %2 = arith.index_cast %1 : i32 to index
    %3 = memref.load %arg2[%2] : memref<1xi32, #tpu.memory_space<smem>>
    %c0_i32 = arith.constant 0 : i32
    %c0_i32_0 = arith.constant 0 : i32
    return %3, %c0_i32 : i32, i32
  }
  func.func @transform_2(%arg0: i32, %arg1: i32, %arg2: memref<1xi32, #tpu.memory_space<smem>>, %arg3: memref<1xi32, #tpu.memory_space<smem>>) -> (i32, i32) {
    %c0_i32 = arith.constant 0 : i32
    %c0_i32_0 = arith.constant 0 : i32
    %c0_i32_1 = arith.constant 0 : i32
    return %c0_i32, %c0_i32_0 : i32, i32
  }
  func.func @transform_3(%arg0: i32, %arg1: i32, %arg2: memref<1xi32, #tpu.memory_space<smem>>, %arg3: memref<1xi32, #tpu.memory_space<smem>>) -> (i32, i32) {
    %c0_i32 = arith.constant 0 : i32
    %c0_i32_0 = arith.constant 0 : i32
    %c0_i32_1 = arith.constant 0 : i32
    return %c0_i32, %c0_i32_0 : i32, i32
  }
  func.func @transform_4(%arg0: i32, %arg1: i32, %arg2: memref<1xi32, #tpu.memory_space<smem>>, %arg3: memref<1xi32, #tpu.memory_space<smem>>) -> (i32, i32) {
    %c0_i32 = arith.constant 0 : i32
    %c0_i32_0 = arith.constant 0 : i32
    return %c0_i32, %arg0 : i32, i32
  }
  func.func @transform_5(%arg0: i32, %arg1: i32, %arg2: memref<1xi32, #tpu.memory_space<smem>>, %arg3: memref<1xi32, #tpu.memory_space<smem>>) -> (i32, i32) {
    %c0_i32 = arith.constant 0 : i32
    %c0_i32_0 = arith.constant 0 : i32
    %c0_i32_1 = arith.constant 0 : i32
    return %c0_i32, %c0_i32_0 : i32, i32
  }
  func.func @transform_6(%arg0: i32, %arg1: i32, %arg2: memref<1xi32, #tpu.memory_space<smem>>, %arg3: memref<1xi32, #tpu.memory_space<smem>>) -> (i32, i32) {
    %c0_i32 = arith.constant 0 : i32
    %c0_i32_0 = arith.constant 0 : i32
    %c0_i32_1 = arith.constant 0 : i32
    return %c0_i32, %c0_i32_0 : i32, i32
  }
  func.func @transform_7(%arg0: i32, %arg1: i32, %arg2: memref<1xi32, #tpu.memory_space<smem>>, %arg3: memref<1xi32, #tpu.memory_space<smem>>) -> (i32, i32) {
    %c0_i32 = arith.constant 0 : i32
    %c0_i32_0 = arith.constant 0 : i32
    %c0_i32_1 = arith.constant 0 : i32
    return %c0_i32, %c0_i32_0 : i32, i32
  }
}

</mosaic_0001>

<bundles_post_ra>
// kernel: _gnn_forward_padded.2
= control target key start
LH: loop header
LB: loop body
LE: loop exit
PB: predicated region body
PF: predicated region fallthrough
CT: control target
= control target key end

     0   :  { %vm75_vm0 = vcmask 130048   ;;  %v277_v0 = vmov 0.0   ;;  %s350_s0 = inlined_call_operand.<no memory space> [shape: s32[1], index: 0, kind: input, shape index: {}]   ;;  %s351_s1 = inlined_call_operand.<no memory space> [shape: s32[1], index: 1, kind: input, shape index: {}]   ;;  %s352_s4 = inlined_call_operand.vmem [shape: bf16[2,16], index: 4, kind: input, shape index: {}]   ;;  %s353_s5 = inlined_call_operand.vmem [shape: f32[1,16], index: 5, kind: input, shape index: {}]   ;;  %s354_s6 = inlined_call_operand.vmem [shape: bf16[16,16], index: 6, kind: output, shape index: {}]   ;;  %s355_s2 = inlined_call_operand.vmem [shape: bf16[16,16], index: 2, kind: input, shape index: {}]   ;;  %s356_s3 = inlined_call_operand.vmem [shape: bf16[16,2], index: 3, kind: input, shape index: {}]  }
   0x1   :  { %p54_p0 = scmp.lt.s32.totalorder %s350_s0, 0  ;;  %s243_s25 = sshll.u32 %s350_s0, 1  ;;  %76 = vst.msk [vmem:[#allocation2] sm:$0xff] %vm75_vm0, %v277_v0  ;;  %77 = vst.msk [vmem:[#allocation2 + $0x8] sm:$0xff] %vm75_vm0, %v277_v0 }
   0x2   :  { %p63_p1 = scmp.lt.s32.totalorder %s243_s25, 1  ;;  %p246_p2 = scmp.le.s32.totalorder %s351_s1, 0 }
   0x3   :  { %s358_s0 = smov (!%p54_p0, %s350_s0), 0  ;;  %v85_v1 = vld [vmem:[%s352_s4] sm:$0x1] (!%p246_p2)  ;;  %vm95_vm1 = vcmask (!%p246_p2), 1040384   ;;  %v278_v2 = vmov (!%p246_p2), 0.0   ;;  %vm279_vm2 = vmmov (!%p246_p2), 0  }
   0x4   :  { %s360_s25 = smov (!%p63_p1, %s243_s25), 1  ;;  %s242_s28 = sshll.u32 %s358_s0, 2  ;;  %260 = vmatprep.subr.bf16.mxu0 (!%p246_p2), %v278_v2  ;;  %v97_v3 = vsel (!%p246_p2), %vm95_vm1, %v85_v1, 0  ;;  %262 = vmatprep.mubr.msk.bf16.mxu0 (!%p246_p2), %vm279_vm2, %v278_v2  ;;  %vm91_vm3 = vcmask (!%p246_p2), 15360  }
   0x5   :  { %s57_s7 = scalar_lea.vmem %s355_s2, %s242_s28  ;;  %s244_s8 = sshll.u32 %s360_s25, 2  ;;  %261 = vmatpush3.bf16.msra.mxu0 (!%p246_p2), %v97_v3  ;;  %266 = vmatprep.subr.bf16.mxu1 (!%p246_p2), %v278_v2 }
   0x6   :  { %s66_s11 = scalar_lea.vmem %s356_s3, %s244_s8  ;;  %82 = sbr.rel (%p246_p2) target bundleno = 444 (0x1bc), region = 25  ;;  %268 = vmatprep.mubr.msk.bf16.mxu1 (!%p246_p2), %vm279_vm2, %v278_v2  ;;  %v276_v10 = vld [vmem:[%s57_s7] sm:$0xff] (!%p246_p2)  }
   0x7   :  { %v275_v4 = vld [vmem:[%s66_s11] sm:$0xff] (!%p246_p2)  }
   0x8   :  { %263 = vmatmul.mubr.msk.bf16.vlgmr.msra.gmra.mrb[0].mxu0 (!%p246_p2), %vm91_vm3, %v275_v4  ;;  %v141_v11 = vld [vmem:[#allocation2] sm:$0xff] (!%p246_p2)  ;;  %v142_v13 = vld [vmem:[#allocation2 + $0x8] sm:$0xff] (!%p246_p2) }
  0xdb   :  { %v133_v5 = vpop.f32.mrb[0].mxu0 }
  0xdc   :  { %v264_v6 = vpop.f32.mrb[1].mxu0 }
  0xdd   :  { %v136_v7 = vpop.f32.mrb[2].mxu0 }
  0xde   :  { %v140_v8 = vpack.c.bf16 %v136_v7, %v133_v5  ;;  %v265_v9 = vpop.f32.mrb[3].mxu0 }
  0xe0   :  { %267 = vmatpush3.bf16.msra.mxu1 %v140_v8 }
  0xe3   :  { %269 = vmatmul.mubr.msk.bf16.vlgmr.msra.gmra.mrb[0].mxu1 %vm75_vm0, %v276_v10 }
 0x1b6   :  { %v188_v12 = vpop.f32.mrb[0].mxu1 }
 0x1b7   :  { %v195_v14 = vadd.f32 %v188_v12, %v141_v11  ;;  %v270_v15 = vpop.f32.mrb[1].mxu1 }
 0x1b8   :  { %v191_v16 = vpop.f32.mrb[2].mxu1 }
 0x1b9   :  { %197 = vst.msk [vmem:[#allocation2] sm:$0xff] %vm75_vm0, %v195_v14  ;;  %v196_v17 = vadd.f32 %v191_v16, %v142_v13  ;;  %v271_v18 = vpop.f32.mrb[3].mxu1 }
 0x1bb   :  { %198 = vst.msk [vmem:[#allocation2 + $0x8] sm:$0xff] %vm75_vm0, %v196_v17 }
 0x1bc PF:  { %v251_v20 = vld [vmem:[%s353_s5] ss:$0 sm:$0xff]  ;;  %vm223_vm4 = vcmask 125952  }
 0x1c0   :  { %v202_v19 = vld [vmem:[#allocation2] sm:$0xff] }
 0x1c1   :  { %v211_v22 = vadd.f32 %v251_v20, %v202_v19 }
 0x1c2   :  { %v203_v21 = vld [vmem:[#allocation2 + $0x8] sm:$0xff] }
 0x1c3   :  { %v212_v23 = vadd.f32 %v251_v20, %v203_v21  ;;  %v213_v24 = vmax.f32 %v211_v22, 0.0 }
 0x1c5   :  { %v214_v25 = vmax.f32 %v212_v23, 0.0  ;;  %v254_v26 = vpack.c.bf16 %v213_v24, %v213_v24 }
 0x1c7   :  { %v255_v27 = vpack.c.bf16 %v214_v25, %v214_v25  ;;  %224 = vst.msk [vmem:[%s354_s6] sm:$0xf] %vm223_vm4, %v254_v26 }
 0x1c9   :  { %225 = vst.msk [vmem:[%s354_s6 + $0x4] sm:$0xf] %vm223_vm4, %v255_v27 }

// kernel: _gnn_forward_padded.3
= control target key start
LH: loop header
LB: loop body
LE: loop exit
PB: predicated region body
PF: predicated region fallthrough
CT: control target
= control target key end

     0   :  { %vm88_vm0 = vcmask 254976   ;;  %vm93_vm1 = vcmask 261120   ;;  %v503_v1 = vmov 0.0   ;;  %s610_s0 = inlined_call_operand.<no memory space> [shape: s32[1], index: 0, kind: input, shape index: {}]   ;;  %s611_s1 = inlined_call_operand.<no memory space> [shape: s32[1], index: 1, kind: input, shape index: {}]   ;;  %s612_s4 = inlined_call_operand.vmem [shape: bf16[16,32], index: 4, kind: input, shape index: {}]   ;;  %s613_s5 = inlined_call_operand.vmem [shape: f32[1,32], index: 5, kind: input, shape index: {}]   ;;  %s614_s6 = inlined_call_operand.vmem [shape: f32[2,16], index: 6, kind: input, shape index: {}]   ;;  %s615_s7 = inlined_call_operand.vmem [shape: f32[32,1], index: 7, kind: input, shape index: {}]   ;;  %s616_s8 = inlined_call_operand.<no memory space> [shape: f32[1,1], index: 8, kind: input, shape index: {}]   ;;  %s617_s9 = inlined_call_operand.vmem [shape: f32[2,1], index: 9, kind: output, shape index: {}]   ;;  %s618_s2 = inlined_call_operand.vmem [shape: bf16[16,16], index: 2, kind: input, shape index: {}]   ;;  %s619_s3 = inlined_call_operand.vmem [shape: bf16[16,16], index: 3, kind: input, shape index: {}]  }
   0x1   :  { %v16_v0 = vstv %s616_s8  ;;  %p65_p0 = scmp.lt.s32.totalorder %s610_s0, 0  ;;  %s426_s15 = sshll.u32 %s610_s0, 1  ;;  %89 = vst.msk [vmem:[#allocation3] sm:$0x3] %vm88_vm0, %v503_v1 }
   0x2   :  { %94 = vst.msk [vmem:[#allocation2] sm:$0xff] %vm93_vm1, %v503_v1  ;;  %95 = vst.msk [vmem:[#allocation2 + $0x8] sm:$0xff] %vm93_vm1, %v503_v1  ;;  %p74_p1 = scmp.lt.s32.totalorder %s426_s15, 1  ;;  %p429_p2 = scmp.le.s32.totalorder %s611_s1, 0 }
   0x3   :  { %17 = vst [vmem:[#allocation7] sm:$0x1] %v16_v0  ;;  %s621_s0 = smov (!%p65_p0, %s610_s0), 0  ;;  %v496_v2 = vld [vmem:[%s612_s4] sm:$0xff] (!%p429_p2)   ;;  %v504_v3 = vmov (!%p429_p2), 0.0   ;;  %vm505_vm2 = vmmov (!%p429_p2), 0  }
   0x4   :  { %s623_s15 = smov (!%p74_p1, %s426_s15), 1  ;;  %s425_s8 = sshll.u32 %s621_s0, 2  ;;  %452 = vmatprep.subr.bf16.mxu0 (!%p429_p2), %v504_v3  ;;  %458 = vmatprep.subr.bf16.mxu1 (!%p429_p2), %v504_v3  ;;  %vm116_vm3 = vcmask (!%p429_p2), 130048  }
   0x5   :  { %s68_s20 = scalar_lea.vmem %s618_s2, %s425_s8  ;;  %s427_s21 = sshll.u32 %s623_s15, 2  ;;  %453 = vmatpush3.bf16.msra.mxu0 (!%p429_p2), %v496_v2  ;;  %454 = vmatprep.mubr.msk.bf16.mxu0 (!%p429_p2), %vm505_vm2, %v504_v3 }
   0x6   :  { %s77_s24 = scalar_lea.vmem %s619_s3, %s427_s21  ;;  %100 = sbr.rel (%p429_p2) target bundleno = 444 (0x1bc), region = 41  ;;  %460 = vmatprep.mubr.msk.bf16.mxu1 (!%p429_p2), %vm505_vm2, %v504_v3  ;;  %v498_v10 = vld [vmem:[%s68_s20] sm:$0xff] (!%p429_p2)  }
   0x7   :  { %v497_v4 = vld [vmem:[%s77_s24] sm:$0xff] (!%p429_p2)  }
   0x8   :  { %455 = vmatmul.mubr.msk.bf16.vlgmr.msra.gmra.mrb[0].mxu0 (!%p429_p2), %vm116_vm3, %v497_v4 }
   0x9   :  { %v162_v11 = vld [vmem:[#allocation2] sm:$0xff] (!%p429_p2)  ;;  %v163_v13 = vld [vmem:[#allocation2 + $0x8] sm:$0xff] (!%p429_p2) }
  0xdb   :  { %v154_v5 = vpop.f32.mrb[0].mxu0 }
  0xdc   :  { %v456_v6 = vpop.f32.mrb[1].mxu0 }
  0xdd   :  { %v157_v7 = vpop.f32.mrb[2].mxu0 }
  0xde   :  { %v161_v8 = vpack.c.bf16 %v157_v7, %v154_v5  ;;  %v457_v9 = vpop.f32.mrb[3].mxu0 }
  0xe0   :  { %459 = vmatpush3.bf16.msra.mxu1 %v161_v8 }
  0xe3   :  { %461 = vmatmul.mubr.msk.bf16.vlgmr.msra.gmra.mrb[0].mxu1 %vm116_vm3, %v498_v10 }
 0x1b6   :  { %v208_v12 = vpop.f32.mrb[0].mxu1 }
 0x1b7   :  { %v215_v14 = vadd.f32 %v208_v12, %v162_v11  ;;  %v462_v15 = vpop.f32.mrb[1].mxu1 }
 0x1b8   :  { %v211_v16 = vpop.f32.mrb[2].mxu1 }
 0x1b9   :  { %218 = vst.msk [vmem:[#allocation2] sm:$0xff] %vm93_vm1, %v215_v14  ;;  %v216_v17 = vadd.f32 %v211_v16, %v163_v13  ;;  %v463_v18 = vpop.f32.mrb[3].mxu1 }
 0x1bb   :  { %219 = vst.msk [vmem:[#allocation2 + $0x8] sm:$0xff] %vm93_vm1, %v216_v17 }
 0x1bc PF:  { %v435_v21 = vld [vmem:[%s613_s5] ss:$0 sm:$0xff]  ;;  %v506_v22 = vmov 0.0|0.0   ;;  %vm507_vm4 = vmmov 0   ;;  %vm236_vm5 = vcmask 130048   ;;  %v317_v28 = vld [vmem:[%s615_s7 + $0x8] sm:$0xff] }
 0x1bd   :  { %482 = vmatprep.subr.bf16.mxu0 %v506_v22  ;;  %468 = vmatprep.mubr.msk.f32.mxu0 %vm507_vm4, %v503_v1  ;;  %v235_v26 = vld [vmem:[%s614_s6] sm:$0x3]  ;;  %v318_v30 = vld [vmem:[%s615_s7 + $0x10] sm:$0xff]  ;;  %v319_v31 = vld [vmem:[%s615_s7 + $0x18] sm:$0xff]  ;;  %vm407_vm6 = vcmask 1024  }
 0x1be   :  { %485 = vmatprep.subr.bf16.mxu1 %v506_v22  ;;  %479 = vmatprep.mubr.msk.f32.mxu1 %vm507_vm4, %v503_v1  ;;  %v316_v27 = vld [vmem:[%s615_s7] sm:$0xff]  ;;  %v489_v32 = vpack.c.bf16 %v319_v31, %v318_v30  ;;  %v234_v33 = vld [vmem:[#allocation3] sm:$0x3]  ;;  %v437_v38 = vld [vmem:[#allocation7] ss:$0 sm:$0xff] }
 0x1bf   :  { %v486_v29 = vpack.c.bf16 %v317_v28, %v316_v27 }
 0x1c0   :  { %v223_v19 = vld [vmem:[#allocation2] sm:$0xff] }
 0x1c1   :  { %v232_v23 = vadd.f32 %v435_v21, %v223_v19  ;;  %487 = vmatpush3.bf16.msra.mxu1 %v486_v29 }
 0x1c2   :  { %v224_v20 = vld [vmem:[#allocation2 + $0x8] sm:$0xff]  ;;  %488 = vmatprep.subr.bf16.mxu1 %v506_v22 }
 0x1c3   :  { %v233_v24 = vadd.f32 %v435_v21, %v224_v20 }
 0x1c5   :  { %v483_v25 = vpack.c.bf16 %v233_v24, %v232_v23  ;;  %490 = vmatpush3.bf16.msra.mxu1 %v489_v32 }
 0x1c7   :  { %484 = vmatpush3.bf16.msra.mxu0 %v483_v25 }
 0x1ca   :  { %469 = vmatmul.mubr.msk.f32.vlgmr.msra.gmra.mrb[0].mxu0 %vm236_vm5, %v235_v26 }
 0x29d   :  { %v306_v34 = vpop.f32.mrb[0].mxu0 }
 0x29e   :  { %v310_v35 = vadd.f32 %v306_v34, %v234_v33  ;;  %v470_v36 = vpop.f32.mrb[1].mxu0 }
 0x2a0   :  { %312 = vst.msk [vmem:[#allocation3] sm:$0x3] %vm88_vm0, %v310_v35 }
 0x2a7   :  { %v315_v37 = vld [vmem:[#allocation3] sm:$0x3] }
 0x2a8   :  { %480 = vmatmul.mubr.msk.f32.vlgmr.msra.gmra.mrb[0].mxu1 %vm93_vm1, %v315_v37 }
 0x37b   :  { %v397_v39 = vpop.f32.mrb[0].mxu1 }
 0x37c   :  { %v398_v40 = vadd.f32 %v437_v38, %v397_v39  ;;  %v481_v41 = vpop.f32.mrb[1].mxu1 }
 0x37e   :  { %v439_v42 = vmul.f32 -1.442695, %v398_v40 }
 0x380   :  { %499 = vpow2.f32 %v439_v42 }
 0x38a   :  { %v500_v43 = vpop.eup %499 }
 0x38b   :  { %v404_v44 = vadd.f32 1.0, %v500_v43 }
 0x38d   :  { %501 = vrcp.f32 %v404_v44 }
 0x397   :  { %v502_v45 = vpop.eup %501 }
 0x398   :  { %408 = vst.msk [vmem:[%s617_s9] sm:$0x3] %vm407_vm6, %v502_v45 }

</bundles_post_ra>
